<compile_context>
chip_gen: v5e
topology: v5e:2x2
jax: 0.10.0
libtpu: 0.0.40
codegen_flags: <defaults>
</compile_context>

<pallas_src>
import functools

import jax
import jax.numpy as jnp
import numpy as np
from jax import lax
from jax.experimental import pallas as pl
from jax.experimental.pallas import tpu as pltpu


# ----------------------------- kernel helpers ------------------------------

def _layernorm(x, w, b, eps=1e-5):
    # PyTorch nn.LayerNorm: biased variance, affine weight/bias (f32 math).
    mu = jnp.mean(x, axis=-1, keepdims=True)
    var = jnp.mean(jnp.square(x - mu), axis=-1, keepdims=True)
    return (x - mu) * lax.rsqrt(var + eps) * w + b


_BLOCK_PARAM_ORDER = ('ln1_w', 'ln1_b', 'wq', 'wk', 'wv', 'w_proj', 'b_proj',
                      'ln2_w', 'ln2_b', 'w_fc1', 'b_fc1', 'w_fc2', 'b_fc2')


# ------------------------------ Pallas kernels ------------------------------

def block_kernel(x_ref, ln1w_ref, ln1b_ref, wq_ref, wk_ref, wv_ref,
                 wproj_ref, bproj_ref, ln2w_ref, ln2b_ref,
                 w1_ref, b1_ref, w2_ref, b2_ref, out_ref, *, n_heads):
    """Grid = (B, L).  Runs ONE transformer Block for (batch b, layer l).

    The residual stream lives in out_ref (same block for all l of a given b),
    initialized from x_ref at l == 0 (accumulator pattern).
    """
    l = pl.program_id(1)

    @pl.when(l == 0)
    def _():
        out_ref[...] = x_ref[...]

    x = out_ref[0]                                   # (T, E) f32 residual
    T, E = x.shape
    hs = E // n_heads
    bf16 = jnp.bfloat16

    # ---- multi-head causal self-attention on ln1(x) ----
    h = _layernorm(x, ln1w_ref[0], ln1b_ref[0])
    h_bf = h.astype(bf16)
    q = jnp.dot(h_bf, wq_ref[0], preferred_element_type=jnp.float32)
    k = jnp.dot(h_bf, wk_ref[0], preferred_element_type=jnp.float32)
    v = jnp.dot(h_bf, wv_ref[0], preferred_element_type=jnp.float32)

    # NOTE: PyTorch Head scales by C**-0.5 with C = n_embeddings (not head_size).
    # Fold the scale into q (T*hs elems) instead of the (T,T) score matrix.
    q = q * (E ** -0.5)

    def split_heads(a):                              # (T, E) -> (H, T, hs)
        return jnp.stack([a[:, hd * hs:(hd + 1) * hs] for hd in range(n_heads)],
                         axis=0)

    qh = split_heads(q).astype(bf16)
    kh = split_heads(k).astype(bf16)
    vh = split_heads(v).astype(bf16)

    # Causal mask built once per tile (every row has >= 1 valid col, so the
    # -inf mask cannot produce a fully-masked softmax row here).
    row = lax.broadcasted_iota(jnp.int32, (T, T), 0)
    col = lax.broadcasted_iota(jnp.int32, (T, T), 1)
    causal = (col <= row)[None, :, :]                # (1, T, T)

    # One batched einsum over all heads (no per-head Python matmul loop).
    wei = jnp.einsum('htd,hsd->hts', qh, kh,
                     preferred_element_type=jnp.float32)       # (H, T, T) f32
    wei = jnp.where(causal, wei, -jnp.inf)
    wei = wei - jnp.max(wei, axis=-1, keepdims=True)
    p = jnp.exp(wei)
    p = p * pl.reciprocal(jnp.sum(p, axis=-1, keepdims=True), approx=True)
    # (attention dropout = identity in eval)

    out_h = jnp.einsum('hts,hsd->htd', p.astype(bf16), vh,
                       preferred_element_type=jnp.float32)     # (H, T, hs)

    # Concatenate heads -> single full-K output projection.
    sa = jnp.concatenate([out_h[hd] for hd in range(n_heads)], axis=-1)  # (T,E)
    sa = jnp.dot(sa.astype(bf16), wproj_ref[0],
                 preferred_element_type=jnp.float32) + bproj_ref[0]
    x = x + sa                                       # residual 1

    # ---- feed-forward on ln2(x) ----
    h2 = _layernorm(x, ln2w_ref[0], ln2b_ref[0])
    ff = jnp.dot(h2.astype(bf16), w1_ref[0],
                 preferred_element_type=jnp.float32) + b1_ref[0]
    ff = jnp.maximum(ff, 0.0)
    ff = jnp.dot(ff.astype(bf16), w2_ref[0],
                 preferred_element_type=jnp.float32) + b2_ref[0]
    out_ref[0] = x + ff                              # residual 2 (carry for l+1)


def lm_head_kernel(x_ref, lnw_ref, lnb_ref, wlm_ref, blm_ref, out_ref):
    """Final LayerNorm + vocab projection on a (TM, E) tile of token rows."""
    h = _layernorm(x_ref[...], lnw_ref[...], lnb_ref[...])
    out_ref[...] = jnp.dot(h.astype(jnp.bfloat16), wlm_ref[...],
                           preferred_element_type=jnp.float32) + blm_ref[...]


# ------------------------------ Python wrappers -----------------------------

def blocks_call(x, bp, n_heads):
    """Run all L transformer blocks in one pallas_call (grid = (B, L))."""
    B, T, E = x.shape
    L = bp['wq'].shape[0]
    weights = [bp[name] for name in _BLOCK_PARAM_ORDER]

    in_specs = [pl.BlockSpec((1, T, E), lambda b, l: (b, 0, 0))]
    in_specs += [pl.BlockSpec((1,) + w.shape[1:], lambda b, l: (l, 0, 0))
                 for w in weights]

    return pl.pallas_call(
        functools.partial(block_kernel, n_heads=n_heads),
        out_shape=jax.ShapeDtypeStruct((B, T, E), jnp.float32),
        grid=(B, L),
        in_specs=in_specs,
        out_specs=pl.BlockSpec((1, T, E), lambda b, l: (b, 0, 0)),
        input_output_aliases={0: 0},                 # x buffer reused in-place
        compiler_params=pltpu.CompilerParams(
            dimension_semantics=("parallel", "arbitrary")),
    )(x, *weights)


def lm_head_call(x, params, vocab_size):
    B, T, E = x.shape
    bt = B * T
    v_pad = params['w_lm'].shape[1]                  # padded vocab (x128)
    xf = x.reshape(bt, E)
    tm = 8 if bt % 8 == 0 else bt                    # token-row tile (sublane-aligned)

    logits = pl.pallas_call(
        lm_head_kernel,
        out_shape=jax.ShapeDtypeStruct((bt, v_pad), jnp.float32),
        grid=(bt // tm,),
        in_specs=[pl.BlockSpec((tm, E), lambda i: (i, 0)),
                  pl.BlockSpec((1, E), lambda i: (0, 0)),
                  pl.BlockSpec((1, E), lambda i: (0, 0)),
                  pl.BlockSpec((E, v_pad), lambda i: (0, 0)),
                  pl.BlockSpec((1, v_pad), lambda i: (0, 0))],
        out_specs=pl.BlockSpec((tm, v_pad), lambda i: (i, 0)),
        compiler_params=pltpu.CompilerParams(
            dimension_semantics=("parallel",)),
    )(xf, params['lnf_w'], params['lnf_b'], params['w_lm'], params['b_lm'])

    return logits[:, :vocab_size].reshape(B, T, vocab_size)


def bigram_forward(idx, params, *, n_heads, vocab_size):
    """BigramModel.forward with targets=None -> returns logits (B, T, V)."""
    B, T = idx.shape
    tok_emb = jnp.take(params['tok_emb'], idx, axis=0)        # gather (glue)
    pos_emb = params['pos_emb'][:T]                           # (T, E)
    x = tok_emb + pos_emb[None, :, :]
    x = blocks_call(x, params['blocks'], n_heads)
    return lm_head_call(x, params, vocab_size)


# ---------------------------- pure-JAX reference ----------------------------

def reference_forward(idx, params, n_heads, vocab_size):
    B, T = idx.shape
    x = jnp.take(params['tok_emb'], idx, axis=0) + params['pos_emb'][:T][None]
    bp = params['blocks']
    L, _, E = bp['wq'].shape
    hs = E // n_heads
    causal = np.tril(np.ones((T, T), dtype=bool))
    f = lambda a: a.astype(jnp.float32)
    for li in range(L):
        h = _layernorm(x, f(bp['ln1_w'][li]), f(bp['ln1_b'][li]))
        q = h @ f(bp['wq'][li]); k = h @ f(bp['wk'][li]); v = h @ f(bp['wv'][li])
        outs = []
        for hd in range(n_heads):
            sl = slice(hd * hs, (hd + 1) * hs)
            wei = jnp.einsum('btd,bsd->bts', q[..., sl], k[..., sl]) * (E ** -0.5)
            wei = jnp.where(causal[None], wei, -jnp.inf)
            wei = jax.nn.softmax(wei, axis=-1)
            outs.append(jnp.einsum('bts,bsd->btd', wei, v[..., sl]))
        sa = jnp.concatenate(outs, axis=-1) @ f(bp['w_proj'][li]) + f(bp['b_proj'][li])
        x = x + sa
        h2 = _layernorm(x, f(bp['ln2_w'][li]), f(bp['ln2_b'][li]))
        ff = jnp.maximum(h2 @ f(bp['w_fc1'][li]) + f(bp['b_fc1'][li]), 0.0)
        ff = ff @ f(bp['w_fc2'][li]) + f(bp['b_fc2'][li])
        x = x + ff
    h = _layernorm(x, params['lnf_w'], params['lnf_b'])
    logits = h @ f(params['w_lm'][:, :vocab_size]) + params['b_lm'][:, :vocab_size]
    return logits


# ---------------------------------- setup ----------------------------------

def init_params(key, vocab_size, n_emb, n_heads, n_layers, ctx):
    def nrm(k, shape, scale=0.02):
        return (scale * jax.random.normal(k, shape)).astype(jnp.float32)

    keys = iter(jax.random.split(key, 4 + 9 * n_layers))
    b16 = jnp.bfloat16
    v_pad = ((vocab_size + 127) // 128) * 128        # lane-dense vocab

    params = {
        'tok_emb': nrm(next(keys), (vocab_size, n_emb), 1.0),
        'pos_emb': nrm(next(keys), (ctx, n_emb), 1.0),
        'lnf_w': jnp.ones((1, n_emb), jnp.float32),
        'lnf_b': jnp.zeros((1, n_emb), jnp.float32),
    }
    w_lm = nrm(next(keys), (n_emb, vocab_size))
    b_lm = nrm(next(keys), (1, vocab_size))
    params['w_lm'] = jnp.pad(w_lm, ((0, 0), (0, v_pad - vocab_size))).astype(b16)
    params['b_lm'] = jnp.pad(b_lm, ((0, 0), (0, v_pad - vocab_size)))

    per_layer = []
    for _ in range(n_layers):
        per_layer.append({
            'ln1_w': jnp.ones((1, n_emb), jnp.float32),
            'ln1_b': jnp.zeros((1, n_emb), jnp.float32),
            'wq': nrm(next(keys), (n_emb, n_emb)),
            'wk': nrm(next(keys), (n_emb, n_emb)),
            'wv': nrm(next(keys), (n_emb, n_emb)),
            'w_proj': nrm(next(keys), (n_emb, n_emb)),
            'b_proj': nrm(next(keys), (1, n_emb)),
            'ln2_w': jnp.ones((1, n_emb), jnp.float32),
            'ln2_b': jnp.zeros((1, n_emb), jnp.float32),
            'w_fc1': nrm(next(keys), (n_emb, 4 * n_emb)),
            'b_fc1': nrm(next(keys), (1, 4 * n_emb)),
            'w_fc2': nrm(next(keys), (4 * n_emb, n_emb)),
            'b_fc2': nrm(next(keys), (1, n_emb)),
        })
    # Stack per-layer params along a leading L axis so one pallas_call iterates
    # layers via a grid axis (layer l+1 weights DMA while layer l computes).
    mm = {'wq', 'wk', 'wv', 'w_proj', 'w_fc1', 'w_fc2'}   # matmul weights -> bf16
    blocks = {}
    for name in per_layer[0]:
        stacked = jnp.stack([lp[name] for lp in per_layer], axis=0)
        blocks[name] = stacked.astype(b16) if name in mm else stacked
    params['blocks'] = blocks
    return params


if __name__ == "__main__":
    vocab_size, n_emb, n_heads, n_layers, ctx = 65, 32, 4, 2, 8
    B, T = 2, 8

    key = jax.random.PRNGKey(0)
    k_params, k_idx = jax.random.split(key)
    params = init_params(k_params, vocab_size, n_emb, n_heads, n_layers, ctx)
    idx = jax.random.randint(k_idx, (B, T), 0, vocab_size, dtype=jnp.int32)

    fwd = jax.jit(functools.partial(bigram_forward,
                                    n_heads=n_heads, vocab_size=vocab_size))
    logits = fwd(idx, params)
    jax.block_until_ready(logits)
    assert logits.shape == (B, T, vocab_size), logits.shape

    ref = reference_forward(idx, params, n_heads, vocab_size)
    np.testing.assert_allclose(np.asarray(logits), np.asarray(ref),
                               rtol=2e-2, atol=2e-2)
    print("KERNEL_OK")
</pallas_src>

<mosaic_0001>
module attributes {stable_mosaic.version = 11 : i64} {
  func.func @lm_head_kernel(%arg0: i32, %arg1: memref<8x32xf32, #tpu.memory_space<vmem>>, %arg2: memref<1x32xf32, #tpu.memory_space<vmem>>, %arg3: memref<1x32xf32, #tpu.memory_space<vmem>>, %arg4: memref<32x128xbf16, #tpu.memory_space<vmem>>, %arg5: memref<1x128xf32, #tpu.memory_space<vmem>>, %arg6: memref<8x128xf32, #tpu.memory_space<vmem>>) attributes {dimension_semantics = [#tpu.dimension_semantics<parallel>], iteration_bounds = array<i64: 2>, scalar_prefetch = 0 : i64, scratch_operands = 0 : i64, tpu.core_type = #tpu.core_type<tc>, window_params = [{transform_indices = @transform_0, window_bounds = array<i64: 8, 32>}, {pipeline_mode = #tpu.pipeline_mode<synchronous>, transform_indices = @transform_1, window_bounds = array<i64: 1, 32>}, {pipeline_mode = #tpu.pipeline_mode<synchronous>, transform_indices = @transform_2, window_bounds = array<i64: 1, 32>}, {pipeline_mode = #tpu.pipeline_mode<synchronous>, transform_indices = @transform_3, window_bounds = array<i64: 32, 128>}, {pipeline_mode = #tpu.pipeline_mode<synchronous>, transform_indices = @transform_4, window_bounds = array<i64: 1, 128>}, {transform_indices = @transform_5, window_bounds = array<i64: 8, 128>}]} {
    %c0 = arith.constant 0 : index
    %c0_0 = arith.constant 0 : index
    %0 = vector.load %arg1[%c0, %c0_0] : memref<8x32xf32, #tpu.memory_space<vmem>>, vector<8x32xf32>
    %c0_1 = arith.constant 0 : index
    %c0_2 = arith.constant 0 : index
    %1 = vector.load %arg2[%c0_1, %c0_2] : memref<1x32xf32, #tpu.memory_space<vmem>>, vector<1x32xf32>
    %c0_3 = arith.constant 0 : index
    %c0_4 = arith.constant 0 : index
    %2 = vector.load %arg3[%c0_3, %c0_4] : memref<1x32xf32, #tpu.memory_space<vmem>>, vector<1x32xf32>
    %cst = arith.constant dense<0.000000e+00> : vector<8xf32>
    %3 = vector.multi_reduction <add>, %0, %cst [1] : vector<8x32xf32> to vector<8xf32>
    %4 = vector.shape_cast %3 : vector<8xf32> to vector<8x1xf32>
    %cst_5 = arith.constant 3.200000e+01 : f32
    %5 = vector.broadcast %cst_5 : f32 to vector<8x1xf32>
    %6 = arith.divf %4, %5 : vector<8x1xf32>
    %7 = vector.broadcast %6 : vector<8x1xf32> to vector<8x32xf32>
    %8 = arith.subf %0, %7 : vector<8x32xf32>
    %9 = arith.mulf %8, %8 : vector<8x32xf32>
    %cst_6 = arith.constant dense<0.000000e+00> : vector<8xf32>
    %10 = vector.multi_reduction <add>, %9, %cst_6 [1] : vector<8x32xf32> to vector<8xf32>
    %11 = vector.shape_cast %10 : vector<8xf32> to vector<8x1xf32>
    %cst_7 = arith.constant 3.200000e+01 : f32
    %12 = vector.broadcast %cst_7 : f32 to vector<8x1xf32>
    %13 = arith.divf %11, %12 : vector<8x1xf32>
    %14 = vector.broadcast %6 : vector<8x1xf32> to vector<8x32xf32>
    %15 = arith.subf %0, %14 : vector<8x32xf32>
    %cst_8 = arith.constant 9.99999974E-6 : f32
    %16 = vector.broadcast %cst_8 : f32 to vector<8x1xf32>
    %17 = arith.addf %13, %16 : vector<8x1xf32>
    %18 = math.rsqrt %17 : vector<8x1xf32>
    %19 = vector.broadcast %18 : vector<8x1xf32> to vector<8x32xf32>
    %20 = arith.mulf %15, %19 : vector<8x32xf32>
    %21 = vector.broadcast %1 : vector<1x32xf32> to vector<8x32xf32>
    %22 = arith.mulf %20, %21 : vector<8x32xf32>
    %23 = vector.broadcast %2 : vector<1x32xf32> to vector<8x32xf32>
    %24 = arith.addf %22, %23 : vector<8x32xf32>
    %25 = arith.truncf %24 : vector<8x32xf32> to vector<8x32xbf16>
    %c0_9 = arith.constant 0 : index
    %c0_10 = arith.constant 0 : index
    %26 = vector.load %arg4[%c0_9, %c0_10] : memref<32x128xbf16, #tpu.memory_space<vmem>>, vector<32x128xbf16>
    %cst_11 = arith.constant dense<0.000000e+00> : vector<8x128xf32>
    %27 = tpu.matmul %25, %26, %cst_11 {dimension_numbers = #tpu.dot_dimension_numbers<[1], [0], [0], [1], [0, 0, 1, 1], [], []>} : vector<8x32xbf16>, vector<32x128xbf16>, vector<8x128xf32> -> vector<8x128xf32>
    %c0_12 = arith.constant 0 : index
    %c0_13 = arith.constant 0 : index
    %28 = vector.load %arg5[%c0_12, %c0_13] : memref<1x128xf32, #tpu.memory_space<vmem>>, vector<1x128xf32>
    %29 = vector.broadcast %28 : vector<1x128xf32> to vector<8x128xf32>
    %30 = arith.addf %27, %29 : vector<8x128xf32>
    %c0_14 = arith.constant 0 : index
    %c0_15 = arith.constant 0 : index
    %31 = vector.load %arg6[%c0_14, %c0_15] : memref<8x128xf32, #tpu.memory_space<vmem>>, vector<8x128xf32>
    tpu.vector_store %arg6[%c0_14, %c0_15], %30 {strides = array<i32>} : memref<8x128xf32, #tpu.memory_space<vmem>>, vector<8x128xf32>,
    return
  }
  func.func @transform_0(%arg0: i32) -> (i32, i32) {
    %c0_i32 = arith.constant 0 : i32
    %c0_i32_0 = arith.constant 0 : i32
    return %arg0, %c0_i32 : i32, i32
  }
  func.func @transform_1(%arg0: i32) -> (i32, i32) {
    %c0_i32 = arith.constant 0 : i32
    %c0_i32_0 = arith.constant 0 : i32
    %c0_i32_1 = arith.constant 0 : i32
    return %c0_i32, %c0_i32_0 : i32, i32
  }
  func.func @transform_2(%arg0: i32) -> (i32, i32) {
    %c0_i32 = arith.constant 0 : i32
    %c0_i32_0 = arith.constant 0 : i32
    %c0_i32_1 = arith.constant 0 : i32
    return %c0_i32, %c0_i32_0 : i32, i32
  }
  func.func @transform_3(%arg0: i32) -> (i32, i32) {
    %c0_i32 = arith.constant 0 : i32
    %c0_i32_0 = arith.constant 0 : i32
    %c0_i32_1 = arith.constant 0 : i32
    return %c0_i32, %c0_i32_0 : i32, i32
  }
  func.func @transform_4(%arg0: i32) -> (i32, i32) {
    %c0_i32 = arith.constant 0 : i32
    %c0_i32_0 = arith.constant 0 : i32
    %c0_i32_1 = arith.constant 0 : i32
    return %c0_i32, %c0_i32_0 : i32, i32
  }
  func.func @transform_5(%arg0: i32) -> (i32, i32) {
    %c0_i32 = arith.constant 0 : i32
    %c0_i32_0 = arith.constant 0 : i32
    return %arg0, %c0_i32 : i32, i32
  }
}

module attributes {stable_mosaic.version = 11 : i64} {
  func.func @block_kernel(%arg0: i32, %arg1: i32, %arg2: memref<1x8x32xf32, #tpu.memory_space<vmem>>, %arg3: memref<1x1x32xf32, #tpu.memory_space<vmem>>, %arg4: memref<1x1x32xf32, #tpu.memory_space<vmem>>, %arg5: memref<1x32x32xbf16, #tpu.memory_space<vmem>>, %arg6: memref<1x32x32xbf16, #tpu.memory_space<vmem>>, %arg7: memref<1x32x32xbf16, #tpu.memory_space<vmem>>, %arg8: memref<1x32x32xbf16, #tpu.memory_space<vmem>>, %arg9: memref<1x1x32xf32, #tpu.memory_space<vmem>>, %arg10: memref<1x1x32xf32, #tpu.memory_space<vmem>>, %arg11: memref<1x1x32xf32, #tpu.memory_space<vmem>>, %arg12: memref<1x32x128xbf16, #tpu.memory_space<vmem>>, %arg13: memref<1x1x128xf32, #tpu.memory_space<vmem>>, %arg14: memref<1x128x32xbf16, #tpu.memory_space<vmem>>, %arg15: memref<1x1x32xf32, #tpu.memory_space<vmem>>, %arg16: memref<1x8x32xf32, #tpu.memory_space<vmem>>) attributes {dimension_semantics = [#tpu.dimension_semantics<parallel>, #tpu.dimension_semantics<arbitrary>], iteration_bounds = array<i64: 2, 2>, scalar_prefetch = 0 : i64, scratch_operands = 0 : i64, tpu.core_type = #tpu.core_type<tc>, window_params = [{transform_indices = @transform_0, window_bounds = array<i64: 1, 8, 32>}, {transform_indices = @transform_1, window_bounds = array<i64: 1, 1, 32>}, {transform_indices = @transform_2, window_bounds = array<i64: 1, 1, 32>}, {transform_indices = @transform_3, window_bounds = array<i64: 1, 32, 32>}, {transform_indices = @transform_4, window_bounds = array<i64: 1, 32, 32>}, {transform_indices = @transform_5, window_bounds = array<i64: 1, 32, 32>}, {transform_indices = @transform_6, window_bounds = array<i64: 1, 32, 32>}, {transform_indices = @transform_7, window_bounds = array<i64: 1, 1, 32>}, {transform_indices = @transform_8, window_bounds = array<i64: 1, 1, 32>}, {transform_indices = @transform_9, window_bounds = array<i64: 1, 1, 32>}, {transform_indices = @transform_10, window_bounds = array<i64: 1, 32, 128>}, {transform_indices = @transform_11, window_bounds = array<i64: 1, 1, 128>}, {transform_indices = @transform_12, window_bounds = array<i64: 1, 128, 32>}, {transform_indices = @transform_13, window_bounds = array<i64: 1, 1, 32>}, {transform_indices = @transform_14, window_bounds = array<i64: 1, 8, 32>}]} {
    %c0_i32 = arith.constant 0 : i32
    %0 = arith.cmpi eq, %arg1, %c0_i32 : i32
    %1 = arith.extui %0 : i1 to i32
    %c0_i32_0 = arith.constant 0 : i32
    %2 = arith.cmpi ne, %1, %c0_i32_0 : i32
    scf.if %2 {
      %c0_67 = arith.constant 0 : index
      %c0_68 = arith.constant 0 : index
      %c0_69 = arith.constant 0 : index
      %160 = vector.load %arg2[%c0_67, %c0_68, %c0_69] : memref<1x8x32xf32, #tpu.memory_space<vmem>>, vector<1x8x32xf32>
      %c0_70 = arith.constant 0 : index
      %c0_71 = arith.constant 0 : index
      %c0_72 = arith.constant 0 : index
      %161 = vector.load %arg16[%c0_70, %c0_71, %c0_72] : memref<1x8x32xf32, #tpu.memory_space<vmem>>, vector<1x8x32xf32>
      tpu.vector_store %arg16[%c0_70, %c0_71, %c0_72], %160 {strides = array<i32>} : memref<1x8x32xf32, #tpu.memory_space<vmem>>, vector<1x8x32xf32>,
    } else {
    }
    %c0 = arith.constant 0 : index
    %c0_1 = arith.constant 0 : index
    %c0_2 = arith.constant 0 : index
    %3 = vector.load %arg16[%c0, %c0_1, %c0_2] : memref<1x8x32xf32, #tpu.memory_space<vmem>>, vector<1x8x32xf32>
    %4 = vector.shape_cast %3 : vector<1x8x32xf32> to vector<8x32xf32>
    %c0_3 = arith.constant 0 : index
    %c0_4 = arith.constant 0 : index
    %c0_5 = arith.constant 0 : index
    %5 = vector.load %arg3[%c0_3, %c0_4, %c0_5] : memref<1x1x32xf32, #tpu.memory_space<vmem>>, vector<1x1x32xf32>
    %6 = vector.shape_cast %5 : vector<1x1x32xf32> to vector<1x32xf32>
    %c0_6 = arith.constant 0 : index
    %c0_7 = arith.constant 0 : index
    %c0_8 = arith.constant 0 : index
    %7 = vector.load %arg4[%c0_6, %c0_7, %c0_8] : memref<1x1x32xf32, #tpu.memory_space<vmem>>, vector<1x1x32xf32>
    %8 = vector.shape_cast %7 : vector<1x1x32xf32> to vector<1x32xf32>
    %cst = arith.constant dense<0.000000e+00> : vector<8xf32>
    %9 = vector.multi_reduction <add>, %4, %cst [1] : vector<8x32xf32> to vector<8xf32>
    %10 = vector.shape_cast %9 : vector<8xf32> to vector<8x1xf32>
    %cst_9 = arith.constant 3.200000e+01 : f32
    %11 = vector.broadcast %cst_9 : f32 to vector<8x1xf32>
    %12 = arith.divf %10, %11 : vector<8x1xf32>
    %13 = vector.broadcast %12 : vector<8x1xf32> to vector<8x32xf32>
    %14 = arith.subf %4, %13 : vector<8x32xf32>
    %15 = arith.mulf %14, %14 : vector<8x32xf32>
    %cst_10 = arith.constant dense<0.000000e+00> : vector<8xf32>
    %16 = vector.multi_reduction <add>, %15, %cst_10 [1] : vector<8x32xf32> to vector<8xf32>
    %17 = vector.shape_cast %16 : vector<8xf32> to vector<8x1xf32>
    %cst_11 = arith.constant 3.200000e+01 : f32
    %18 = vector.broadcast %cst_11 : f32 to vector<8x1xf32>
    %19 = arith.divf %17, %18 : vector<8x1xf32>
    %20 = vector.broadcast %12 : vector<8x1xf32> to vector<8x32xf32>
    %21 = arith.subf %4, %20 : vector<8x32xf32>
    %cst_12 = arith.constant 9.99999974E-6 : f32
    %22 = vector.broadcast %cst_12 : f32 to vector<8x1xf32>
    %23 = arith.addf %19, %22 : vector<8x1xf32>
    %24 = math.rsqrt %23 : vector<8x1xf32>
    %25 = vector.broadcast %24 : vector<8x1xf32> to vector<8x32xf32>
    %26 = arith.mulf %21, %25 : vector<8x32xf32>
    %27 = vector.broadcast %6 : vector<1x32xf32> to vector<8x32xf32>
    %28 = arith.mulf %26, %27 : vector<8x32xf32>
    %29 = vector.broadcast %8 : vector<1x32xf32> to vector<8x32xf32>
    %30 = arith.addf %28, %29 : vector<8x32xf32>
    %31 = arith.truncf %30 : vector<8x32xf32> to vector<8x32xbf16>
    %c0_13 = arith.constant 0 : index
    %c0_14 = arith.constant 0 : index
    %c0_15 = arith.constant 0 : index
    %32 = vector.load %arg5[%c0_13, %c0_14, %c0_15] : memref<1x32x32xbf16, #tpu.memory_space<vmem>>, vector<1x32x32xbf16>
    %33 = vector.shape_cast %32 : vector<1x32x32xbf16> to vector<32x32xbf16>
    %cst_16 = arith.constant dense<0.000000e+00> : vector<8x32xf32>
    %34 = tpu.matmul %31, %33, %cst_16 {dimension_numbers = #tpu.dot_dimension_numbers<[1], [0], [0], [1], [0, 0, 1, 1], [], []>} : vector<8x32xbf16>, vector<32x32xbf16>, vector<8x32xf32> -> vector<8x32xf32>
    %c0_17 = arith.constant 0 : index
    %c0_18 = arith.constant 0 : index
    %c0_19 = arith.constant 0 : index
    %35 = vector.load %arg6[%c0_17, %c0_18, %c0_19] : memref<1x32x32xbf16, #tpu.memory_space<vmem>>, vector<1x32x32xbf16>
    %36 = vector.shape_cast %35 : vector<1x32x32xbf16> to vector<32x32xbf16>
    %cst_20 = arith.constant dense<0.000000e+00> : vector<8x32xf32>
    %37 = tpu.matmul %31, %36, %cst_20 {dimension_numbers = #tpu.dot_dimension_numbers<[1], [0], [0], [1], [0, 0, 1, 1], [], []>} : vector<8x32xbf16>, vector<32x32xbf16>, vector<8x32xf32> -> vector<8x32xf32>
    %c0_21 = arith.constant 0 : index
    %c0_22 = arith.constant 0 : index
    %c0_23 = arith.constant 0 : index
    %38 = vector.load %arg7[%c0_21, %c0_22, %c0_23] : memref<1x32x32xbf16, #tpu.memory_space<vmem>>, vector<1x32x32xbf16>
    %39 = vector.shape_cast %38 : vector<1x32x32xbf16> to vector<32x32xbf16>
    %cst_24 = arith.constant dense<0.000000e+00> : vector<8x32xf32>
    %40 = tpu.matmul %31, %39, %cst_24 {dimension_numbers = #tpu.dot_dimension_numbers<[1], [0], [0], [1], [0, 0, 1, 1], [], []>} : vector<8x32xbf16>, vector<32x32xbf16>, vector<8x32xf32> -> vector<8x32xf32>
    %cst_25 = arith.constant 0.176776692 : f32
    %41 = vector.broadcast %cst_25 : f32 to vector<8x32xf32>
    %42 = arith.mulf %34, %41 : vector<8x32xf32>
    %43 = vector.extract_strided_slice %42 {offsets = [0, 0], sizes = [8, 8], strides = [1, 1]} : vector<8x32xf32> to vector<8x8xf32>
    %44 = vector.extract_strided_slice %42 {offsets = [0, 8], sizes = [8, 8], strides = [1, 1]} : vector<8x32xf32> to vector<8x8xf32>
    %45 = vector.extract_strided_slice %42 {offsets = [0, 16], sizes = [8, 8], strides = [1, 1]} : vector<8x32xf32> to vector<8x8xf32>
    %46 = vector.extract_strided_slice %42 {offsets = [0, 24], sizes = [8, 8], strides = [1, 1]} : vector<8x32xf32> to vector<8x8xf32>
    %47 = vector.shape_cast %43 : vector<8x8xf32> to vector<1x8x8xf32>
    %48 = vector.shape_cast %44 : vector<8x8xf32> to vector<1x8x8xf32>
    %49 = vector.shape_cast %45 : vector<8x8xf32> to vector<1x8x8xf32>
    %50 = vector.shape_cast %46 : vector<8x8xf32> to vector<1x8x8xf32>
    %51 = tpu.concatenate %47, %48, %49, %50 in 0 : vector<1x8x8xf32>, vector<1x8x8xf32>, vector<1x8x8xf32>, vector<1x8x8xf32> -> vector<4x8x8xf32>
    %52 = arith.truncf %51 : vector<4x8x8xf32> to vector<4x8x8xbf16>
    %53 = vector.extract_strided_slice %37 {offsets = [0, 0], sizes = [8, 8], strides = [1, 1]} : vector<8x32xf32> to vector<8x8xf32>
    %54 = vector.extract_strided_slice %37 {offsets = [0, 8], sizes = [8, 8], strides = [1, 1]} : vector<8x32xf32> to vector<8x8xf32>
    %55 = vector.extract_strided_slice %37 {offsets = [0, 16], sizes = [8, 8], strides = [1, 1]} : vector<8x32xf32> to vector<8x8xf32>
    %56 = vector.extract_strided_slice %37 {offsets = [0, 24], sizes = [8, 8], strides = [1, 1]} : vector<8x32xf32> to vector<8x8xf32>
    %57 = vector.shape_cast %53 : vector<8x8xf32> to vector<1x8x8xf32>
    %58 = vector.shape_cast %54 : vector<8x8xf32> to vector<1x8x8xf32>
    %59 = vector.shape_cast %55 : vector<8x8xf32> to vector<1x8x8xf32>
    %60 = vector.shape_cast %56 : vector<8x8xf32> to vector<1x8x8xf32>
    %61 = tpu.concatenate %57, %58, %59, %60 in 0 : vector<1x8x8xf32>, vector<1x8x8xf32>, vector<1x8x8xf32>, vector<1x8x8xf32> -> vector<4x8x8xf32>
    %62 = arith.truncf %61 : vector<4x8x8xf32> to vector<4x8x8xbf16>
    %63 = vector.extract_strided_slice %40 {offsets = [0, 0], sizes = [8, 8], strides = [1, 1]} : vector<8x32xf32> to vector<8x8xf32>
    %64 = vector.extract_strided_slice %40 {offsets = [0, 8], sizes = [8, 8], strides = [1, 1]} : vector<8x32xf32> to vector<8x8xf32>
    %65 = vector.extract_strided_slice %40 {offsets = [0, 16], sizes = [8, 8], strides = [1, 1]} : vector<8x32xf32> to vector<8x8xf32>
    %66 = vector.extract_strided_slice %40 {offsets = [0, 24], sizes = [8, 8], strides = [1, 1]} : vector<8x32xf32> to vector<8x8xf32>
    %67 = vector.shape_cast %63 : vector<8x8xf32> to vector<1x8x8xf32>
    %68 = vector.shape_cast %64 : vector<8x8xf32> to vector<1x8x8xf32>
    %69 = vector.shape_cast %65 : vector<8x8xf32> to vector<1x8x8xf32>
    %70 = vector.shape_cast %66 : vector<8x8xf32> to vector<1x8x8xf32>
    %71 = tpu.concatenate %67, %68, %69, %70 in 0 : vector<1x8x8xf32>, vector<1x8x8xf32>, vector<1x8x8xf32>, vector<1x8x8xf32> -> vector<4x8x8xf32>
    %72 = arith.truncf %71 : vector<4x8x8xf32> to vector<4x8x8xbf16>
    %73 = tpu.iota {dimensions = array<i32: 0>} : vector<8x8xi32>
    %74 = tpu.iota {dimensions = array<i32: 1>} : vector<8x8xi32>
    %75 = arith.cmpi sle, %74, %73 : vector<8x8xi32>
    %76 = vector.shape_cast %75 : vector<8x8xi1> to vector<1x8x8xi1>
    "tpu.trace_start"() <{level = 10 : i32, message = "htd,hsd->hts"}> : () -> ()
    %cst_26 = arith.constant dense<0.000000e+00> : vector<4x8x8xf32>
    %77 = tpu.matmul %52, %62, %cst_26 {dimension_numbers = #tpu.dot_dimension_numbers<[2], [2], [1], [1], [0, 0, 0, 1, 1, 1], [0], [0]>} : vector<4x8x8xbf16>, vector<4x8x8xbf16>, vector<4x8x8xf32> -> vector<4x8x8xf32>
    %cst_27 = arith.constant 0xFF800000 : f32
    "tpu.trace_stop"() : () -> ()
    %78 = vector.shape_cast %76 : vector<1x8x8xi1> to vector<1x8x8xi1>
    %79 = vector.broadcast %78 : vector<1x8x8xi1> to vector<4x8x8xi1>
    %80 = vector.broadcast %cst_27 : f32 to vector<4x8x8xf32>
    %81 = arith.select %79, %77, %80 : vector<4x8x8xi1>, vector<4x8x8xf32>
    %cst_28 = arith.constant dense<0xFF800000> : vector<4x8xf32>
    %82 = vector.multi_reduction <maximumf>, %81, %cst_28 [2] : vector<4x8x8xf32> to vector<4x8xf32>
    %83 = vector.shape_cast %82 : vector<4x8xf32> to vector<4x8x1xf32>
    %84 = vector.broadcast %83 : vector<4x8x1xf32> to vector<4x8x8xf32>
    %85 = arith.subf %81, %84 : vector<4x8x8xf32>
    %86 = math.exp %85 : vector<4x8x8xf32>
    %cst_29 = arith.constant dense<0.000000e+00> : vector<4x8xf32>
    %87 = vector.multi_reduction <add>, %86, %cst_29 [2] : vector<4x8x8xf32> to vector<4x8xf32>
    %88 = vector.shape_cast %87 : vector<4x8xf32> to vector<4x8x1xf32>
    %89 = tpu.reciprocal %88 {approx = true} : vector<4x8x1xf32> -> vector<4x8x1xf32>
    %90 = vector.broadcast %89 : vector<4x8x1xf32> to vector<4x8x8xf32>
    %91 = arith.mulf %86, %90 : vector<4x8x8xf32>
    %92 = arith.truncf %91 : vector<4x8x8xf32> to vector<4x8x8xbf16>
    "tpu.trace_start"() <{level = 10 : i32, message = "hts,hsd->htd"}> : () -> ()
    %cst_30 = arith.constant dense<0.000000e+00> : vector<4x8x8xf32>
    %93 = tpu.matmul %92, %72, %cst_30 {dimension_numbers = #tpu.dot_dimension_numbers<[2], [1], [1], [2], [0, 0, 0, 1, 1, 2], [0], [0]>} : vector<4x8x8xbf16>, vector<4x8x8xbf16>, vector<4x8x8xf32> -> vector<4x8x8xf32>
    "tpu.trace_stop"() : () -> ()
    %94 = vector.extract_strided_slice %93 {offsets = [0, 0, 0], sizes = [1, 8, 8], strides = [1, 1, 1]} : vector<4x8x8xf32> to vector<1x8x8xf32>
    %95 = vector.shape_cast %94 : vector<1x8x8xf32> to vector<8x8xf32>
    %96 = vector.extract_strided_slice %93 {offsets = [1, 0, 0], sizes = [1, 8, 8], strides = [1, 1, 1]} : vector<4x8x8xf32> to vector<1x8x8xf32>
    %97 = vector.shape_cast %96 : vector<1x8x8xf32> to vector<8x8xf32>
    %98 = vector.extract_strided_slice %93 {offsets = [2, 0, 0], sizes = [1, 8, 8], strides = [1, 1, 1]} : vector<4x8x8xf32> to vector<1x8x8xf32>
    %99 = vector.shape_cast %98 : vector<1x8x8xf32> to vector<8x8xf32>
    %100 = vector.extract_strided_slice %93 {offsets = [3, 0, 0], sizes = [1, 8, 8], strides = [1, 1, 1]} : vector<4x8x8xf32> to vector<1x8x8xf32>
    %101 = vector.shape_cast %100 : vector<1x8x8xf32> to vector<8x8xf32>
    %102 = tpu.concatenate %95, %97, %99, %101 in 1 : vector<8x8xf32>, vector<8x8xf32>, vector<8x8xf32>, vector<8x8xf32> -> vector<8x32xf32>
    %103 = arith.truncf %102 : vector<8x32xf32> to vector<8x32xbf16>
    %c0_31 = arith.constant 0 : index
    %c0_32 = arith.constant 0 : index
    %c0_33 = arith.constant 0 : index
    %104 = vector.load %arg8[%c0_31, %c0_32, %c0_33] : memref<1x32x32xbf16, #tpu.memory_space<vmem>>, vector<1x32x32xbf16>
    %105 = vector.shape_cast %104 : vector<1x32x32xbf16> to vector<32x32xbf16>
    %cst_34 = arith.constant dense<0.000000e+00> : vector<8x32xf32>
    %106 = tpu.matmul %103, %105, %cst_34 {dimension_numbers = #tpu.dot_dimension_numbers<[1], [0], [0], [1], [0, 0, 1, 1], [], []>} : vector<8x32xbf16>, vector<32x32xbf16>, vector<8x32xf32> -> vector<8x32xf32>
    %c0_35 = arith.constant 0 : index
    %c0_36 = arith.constant 0 : index
    %c0_37 = arith.constant 0 : index
    %107 = vector.load %arg9[%c0_35, %c0_36, %c0_37] : memref<1x1x32xf32, #tpu.memory_space<vmem>>, vector<1x1x32xf32>
    %108 = vector.shape_cast %107 : vector<1x1x32xf32> to vector<1x32xf32>
    %109 = vector.broadcast %108 : vector<1x32xf32> to vector<8x32xf32>
    %110 = arith.addf %106, %109 : vector<8x32xf32>
    %111 = arith.addf %4, %110 : vector<8x32xf32>
    %c0_38 = arith.constant 0 : index
    %c0_39 = arith.constant 0 : index
    %c0_40 = arith.constant 0 : index
    %112 = vector.load %arg10[%c0_38, %c0_39, %c0_40] : memref<1x1x32xf32, #tpu.memory_space<vmem>>, vector<1x1x32xf32>
    %113 = vector.shape_cast %112 : vector<1x1x32xf32> to vector<1x32xf32>
    %c0_41 = arith.constant 0 : index
    %c0_42 = arith.constant 0 : index
    %c0_43 = arith.constant 0 : index
    %114 = vector.load %arg11[%c0_41, %c0_42, %c0_43] : memref<1x1x32xf32, #tpu.memory_space<vmem>>, vector<1x1x32xf32>
    %115 = vector.shape_cast %114 : vector<1x1x32xf32> to vector<1x32xf32>
    %cst_44 = arith.constant dense<0.000000e+00> : vector<8xf32>
    %116 = vector.multi_reduction <add>, %111, %cst_44 [1] : vector<8x32xf32> to vector<8xf32>
    %117 = vector.shape_cast %116 : vector<8xf32> to vector<8x1xf32>
    %cst_45 = arith.constant 3.200000e+01 : f32
    %118 = vector.broadcast %cst_45 : f32 to vector<8x1xf32>
    %119 = arith.divf %117, %118 : vector<8x1xf32>
    %120 = vector.broadcast %119 : vector<8x1xf32> to vector<8x32xf32>
    %121 = arith.subf %111, %120 : vector<8x32xf32>
    %122 = arith.mulf %121, %121 : vector<8x32xf32>
    %cst_46 = arith.constant dense<0.000000e+00> : vector<8xf32>
    %123 = vector.multi_reduction <add>, %122, %cst_46 [1] : vector<8x32xf32> to vector<8xf32>
    %124 = vector.shape_cast %123 : vector<8xf32> to vector<8x1xf32>
    %cst_47 = arith.constant 3.200000e+01 : f32
    %125 = vector.broadcast %cst_47 : f32 to vector<8x1xf32>
    %126 = arith.divf %124, %125 : vector<8x1xf32>
    %127 = vector.broadcast %119 : vector<8x1xf32> to vector<8x32xf32>
    %128 = arith.subf %111, %127 : vector<8x32xf32>
    %cst_48 = arith.constant 9.99999974E-6 : f32
    %129 = vector.broadcast %cst_48 : f32 to vector<8x1xf32>
    %130 = arith.addf %126, %129 : vector<8x1xf32>
    %131 = math.rsqrt %130 : vector<8x1xf32>
    %132 = vector.broadcast %131 : vector<8x1xf32> to vector<8x32xf32>
    %133 = arith.mulf %128, %132 : vector<8x32xf32>
    %134 = vector.broadcast %113 : vector<1x32xf32> to vector<8x32xf32>
    %135 = arith.mulf %133, %134 : vector<8x32xf32>
    %136 = vector.broadcast %115 : vector<1x32xf32> to vector<8x32xf32>
    %137 = arith.addf %135, %136 : vector<8x32xf32>
    %138 = arith.truncf %137 : vector<8x32xf32> to vector<8x32xbf16>
    %c0_49 = arith.constant 0 : index
    %c0_50 = arith.constant 0 : index
    %c0_51 = arith.constant 0 : index
    %139 = vector.load %arg12[%c0_49, %c0_50, %c0_51] : memref<1x32x128xbf16, #tpu.memory_space<vmem>>, vector<1x32x128xbf16>
    %140 = vector.shape_cast %139 : vector<1x32x128xbf16> to vector<32x128xbf16>
    %cst_52 = arith.constant dense<0.000000e+00> : vector<8x128xf32>
    %141 = tpu.matmul %138, %140, %cst_52 {dimension_numbers = #tpu.dot_dimension_numbers<[1], [0], [0], [1], [0, 0, 1, 1], [], []>} : vector<8x32xbf16>, vector<32x128xbf16>, vector<8x128xf32> -> vector<8x128xf32>
    %c0_53 = arith.constant 0 : index
    %c0_54 = arith.constant 0 : index
    %c0_55 = arith.constant 0 : index
    %142 = vector.load %arg13[%c0_53, %c0_54, %c0_55] : memref<1x1x128xf32, #tpu.memory_space<vmem>>, vector<1x1x128xf32>
    %143 = vector.shape_cast %142 : vector<1x1x128xf32> to vector<1x128xf32>
    %144 = vector.broadcast %143 : vector<1x128xf32> to vector<8x128xf32>
    %145 = arith.addf %141, %144 : vector<8x128xf32>
    %cst_56 = arith.constant 0.000000e+00 : f32
    %146 = vector.broadcast %cst_56 : f32 to vector<8x128xf32>
    %147 = arith.maximumf %145, %146 : vector<8x128xf32>
    %148 = arith.truncf %147 : vector<8x128xf32> to vector<8x128xbf16>
    %c0_57 = arith.constant 0 : index
    %c0_58 = arith.constant 0 : index
    %c0_59 = arith.constant 0 : index
    %149 = vector.load %arg14[%c0_57, %c0_58, %c0_59] : memref<1x128x32xbf16, #tpu.memory_space<vmem>>, vector<1x128x32xbf16>
    %150 = vector.shape_cast %149 : vector<1x128x32xbf16> to vector<128x32xbf16>
    %cst_60 = arith.constant dense<0.000000e+00> : vector<8x32xf32>
    %151 = tpu.matmul %148, %150, %cst_60 {dimension_numbers = #tpu.dot_dimension_numbers<[1], [0], [0], [1], [0, 0, 1, 1], [], []>} : vector<8x128xbf16>, vector<128x32xbf16>, vector<8x32xf32> -> vector<8x32xf32>
    %c0_61 = arith.constant 0 : index
    %c0_62 = arith.constant 0 : index
    %c0_63 = arith.constant 0 : index
    %152 = vector.load %arg15[%c0_61, %c0_62, %c0_63] : memref<1x1x32xf32, #tpu.memory_space<vmem>>, vector<1x1x32xf32>
    %153 = vector.shape_cast %152 : vector<1x1x32xf32> to vector<1x32xf32>
    %154 = vector.broadcast %153 : vector<1x32xf32> to vector<8x32xf32>
    %155 = arith.addf %151, %154 : vector<8x32xf32>
    %156 = arith.addf %111, %155 : vector<8x32xf32>
    %c0_64 = arith.constant 0 : index
    %c0_65 = arith.constant 0 : index
    %c0_66 = arith.constant 0 : index
    %157 = vector.load %arg16[%c0_64, %c0_65, %c0_66] : memref<1x8x32xf32, #tpu.memory_space<vmem>>, vector<1x8x32xf32>
    %158 = vector.shape_cast %157 : vector<1x8x32xf32> to vector<8x32xf32>
    %159 = vector.shape_cast %156 : vector<8x32xf32> to vector<1x8x32xf32>
    tpu.vector_store %arg16[%c0_64, %c0_65, %c0_66], %159 {strides = array<i32>} : memref<1x8x32xf32, #tpu.memory_space<vmem>>, vector<1x8x32xf32>,
    return
  }
  func.func @transform_0(%arg0: i32, %arg1: i32) -> (i32, i32, i32) {
    %c0_i32 = arith.constant 0 : i32
    %c0_i32_0 = arith.constant 0 : i32
    %c0_i32_1 = arith.constant 0 : i32
    return %arg0, %c0_i32, %c0_i32_0 : i32, i32, i32
  }
  func.func @transform_1(%arg0: i32, %arg1: i32) -> (i32, i32, i32) {
    %c0_i32 = arith.constant 0 : i32
    %c0_i32_0 = arith.constant 0 : i32
    %c0_i32_1 = arith.constant 0 : i32
    return %arg1, %c0_i32, %c0_i32_0 : i32, i32, i32
  }
  func.func @transform_2(%arg0: i32, %arg1: i32) -> (i32, i32, i32) {
    %c0_i32 = arith.constant 0 : i32
    %c0_i32_0 = arith.constant 0 : i32
    %c0_i32_1 = arith.constant 0 : i32
    return %arg1, %c0_i32, %c0_i32_0 : i32, i32, i32
  }
  func.func @transform_3(%arg0: i32, %arg1: i32) -> (i32, i32, i32) {
    %c0_i32 = arith.constant 0 : i32
    %c0_i32_0 = arith.constant 0 : i32
    %c0_i32_1 = arith.constant 0 : i32
    return %arg1, %c0_i32, %c0_i32_0 : i32, i32, i32
  }
  func.func @transform_4(%arg0: i32, %arg1: i32) -> (i32, i32, i32) {
    %c0_i32 = arith.constant 0 : i32
    %c0_i32_0 = arith.constant 0 : i32
    %c0_i32_1 = arith.constant 0 : i32
    return %arg1, %c0_i32, %c0_i32_0 : i32, i32, i32
  }
  func.func @transform_5(%arg0: i32, %arg1: i32) -> (i32, i32, i32) {
    %c0_i32 = arith.constant 0 : i32
    %c0_i32_0 = arith.constant 0 : i32
    %c0_i32_1 = arith.constant 0 : i32
    return %arg1, %c0_i32, %c0_i32_0 : i32, i32, i32
  }
  func.func @transform_6(%arg0: i32, %arg1: i32) -> (i32, i32, i32) {
    %c0_i32 = arith.constant 0 : i32
    %c0_i32_0 = arith.constant 0 : i32
    %c0_i32_1 = arith.constant 0 : i32
    return %arg1, %c0_i32, %c0_i32_0 : i32, i32, i32
  }
  func.func @transform_7(%arg0: i32, %arg1: i32) -> (i32, i32, i32) {
    %c0_i32 = arith.constant 0 : i32
    %c0_i32_0 = arith.constant 0 : i32
    %c0_i32_1 = arith.constant 0 : i32
    return %arg1, %c0_i32, %c0_i32_0 : i32, i32, i32
  }
  func.func @transform_8(%arg0: i32, %arg1: i32) -> (i32, i32, i32) {
    %c0_i32 = arith.constant 0 : i32
    %c0_i32_0 = arith.constant 0 : i32
    %c0_i32_1 = arith.constant 0 : i32
    return %arg1, %c0_i32, %c0_i32_0 : i32, i32, i32
  }
  func.func @transform_9(%arg0: i32, %arg1: i32) -> (i32, i32, i32) {
    %c0_i32 = arith.constant 0 : i32
    %c0_i32_0 = arith.constant 0 : i32
    %c0_i32_1 = arith.constant 0 : i32
    return %arg1, %c0_i32, %c0_i32_0 : i32, i32, i32
  }
  func.func @transform_10(%arg0: i32, %arg1: i32) -> (i32, i32, i32) {
    %c0_i32 = arith.constant 0 : i32
    %c0_i32_0 = arith.constant 0 : i32
    %c0_i32_1 = arith.constant 0 : i32
    return %arg1, %c0_i32, %c0_i32_0 : i32, i32, i32
  }
  func.func @transform_11(%arg0: i32, %arg1: i32) -> (i32, i32, i32) {
    %c0_i32 = arith.constant 0 : i32
    %c0_i32_0 = arith.constant 0 : i32
    %c0_i32_1 = arith.constant 0 : i32
    return %arg1, %c0_i32, %c0_i32_0 : i32, i32, i32
  }
  func.func @transform_12(%arg0: i32, %arg1: i32) -> (i32, i32, i32) {
    %c0_i32 = arith.constant 0 : i32
    %c0_i32_0 = arith.constant 0 : i32
    %c0_i32_1 = arith.constant 0 : i32
    return %arg1, %c0_i32, %c0_i32_0 : i32, i32, i32
  }
  func.func @transform_13(%arg0: i32, %arg1: i32) -> (i32, i32, i32) {
    %c0_i32 = arith.constant 0 : i32
    %c0_i32_0 = arith.constant 0 : i32
    %c0_i32_1 = arith.constant 0 : i32
    return %arg1, %c0_i32, %c0_i32_0 : i32, i32, i32
  }
  func.func @transform_14(%arg0: i32, %arg1: i32) -> (i32, i32, i32) {
    %c0_i32 = arith.constant 0 : i32
    %c0_i32_0 = arith.constant 0 : i32
    %c0_i32_1 = arith.constant 0 : i32
    return %arg0, %c0_i32, %c0_i32_0 : i32, i32, i32
  }
}

</mosaic_0001>

<bundles_post_ra>
// kernel: bigram_forward.3
= control target key start
LH: loop header
LB: loop body
LE: loop exit
PB: predicated region body
PF: predicated region fallthrough
CT: control target
= control target key end

     0   :  { %s428_s18 = smov 0   ;;  %s470_s0 = inlined_call_operand.vmem [shape: f32[16,32], index: 0, kind: input, shape index: {}]   ;;  %s471_s1 = inlined_call_operand.vmem [shape: f32[1,32], index: 1, kind: input, shape index: {}]   ;;  %s472_s2 = inlined_call_operand.vmem [shape: f32[1,32], index: 2, kind: input, shape index: {}]   ;;  %s473_s3 = inlined_call_operand.vmem [shape: bf16[32,128], index: 3, kind: input, shape index: {}]   ;;  %s474_s4 = inlined_call_operand.vmem [shape: f32[1,128], index: 4, kind: input, shape index: {}]   ;;  %s475_s5 = inlined_call_operand.vmem [shape: f32[16,128], index: 5, kind: output, shape index: {}]  }
   0x1 LB: > { %s353_s19 = sadd.s32 4294967295, %s395_s18   ;;  %p357_p0 = scmp.ge.s32.totalorder %s395_s18, 1  ;;  %s395_s18 = sphi %s428_s18, %s15_s18  }
   0x2   : > { %p186_p1 = scmp.lt.s32.totalorder %s395_s18, 3 }
   0x4   : > { %p187_p2 = pnand %p357_p0, %p186_p1 }
   0x5   : > { %p212_p3 = scmp.lt.s32.totalorder (!%p187_p2), %s353_s19, 1 }
   0x6   : > { %190 = sbr.rel (%p187_p2) target bundleno = 419 (0x1a3), region = 40 }
   0xb   : > { %s477_s19 = smov (!%p212_p3, %s353_s19), 1  ;;  %vm224_vm0 = vcmask 261120   ;;  %v397_v2 = vmov 32.0   ;;  %v372_v14 = vld [vmem:[%s473_s3 + $0x8] sm:$0xff]  ;;  %v371_v15 = vld [vmem:[%s473_s3] sm:$0xff] }
   0xc   : > { %s358_s20 = sshll.u32 %s477_s19, 3  ;;  %385 = vrcp.f32 %v397_v2  ;;  %292 = vmatpush.bf16.msra.mxu0 %v372_v14  ;;  %v382_v25 = vld [vmem:[%s471_s1] ss:$0 sm:$0xff] }
   0xd   : > { %s215_s23 = scalar_lea.vmem %s470_s0, %s358_s20  ;;  %v383_v28 = vld [vmem:[%s472_s2] ss:$0 sm:$0xff]  ;;  %s219_s11 = scalar_lea.vmem %s475_s5, %s358_s20 }
   0xe   : > { %v221_v0 = vld [vmem:[%s215_s23] sm:$0xff] }
   0xf   : > { %v225_v1 = vsel %vm224_vm0, %v221_v0, 0.0  ;;  %v384_v32 = vld [vmem:[%s474_s4] ss:$0 sm:$0xff] }
  0x10   : > { %226 = vadd.xlane.f32.xlu0 %v225_v1  ;;  %293 = vmatpush.bf16.msra.mxu0 %v371_v15 }
  0x12   : > { %v386_v3 = vpop.eup %385 }
  0x13   : > { %v229_v4 = vmul.f32 32.0, %v386_v3  ;;  %vm233_vm1 = vweird.f32 %v386_v3 }
  0x15   : > { %v230_v5 = vsub.f32 1.0, %v229_v4 }
  0x17   : > { %v231_v6 = vmul.f32 %v386_v3, %v230_v5 }
  0x19   : > { %v232_v7 = vadd.f32 %v386_v3, %v231_v6 }
  0x1b   : > { %v234_v8 = vsel %vm233_vm1, %v386_v3, %v232_v7 }
  0x83   : > { %v227_v9 = vpop.xlane.xlu0 %226 }
  0x84   : > { %v235_v10 = vmul.f32 %v234_v8, %v227_v9 }
  0x86   : > { %v236_v11 = vsub.f32 %v221_v0, %v235_v10 }
  0x88   : > { %v237_v12 = vmul.f32 %v236_v11, %v236_v11 }
  0x8a   : > { %v238_v13 = vsel %vm224_vm0, %v237_v12, 0.0 }
  0x8b   : > { %239 = vadd.xlane.f32.xlu0 %v238_v13 }
  0xfe   : > { %v240_v16 = vpop.xlane.xlu0 %239 }
  0xff   : > { %v241_v17 = vmul.f32 %v240_v16, %v234_v8 }
 0x101   : > { %v242_v18 = vadd.f32 1e-05, %v241_v17 }
 0x103   : > { %387 = vrsqrt.f32 %v242_v18  ;;  %vm249_vm3 = vweird.f32 %v242_v18 }
 0x109   : > { %v388_v19 = vpop.eup %387 }
 0x10a   : > { %v244_v20 = vmul.f32 %v388_v19, %v242_v18  ;;  %vm250_vm2 = vweird.f32 %v388_v19 }
 0x10b   : > { %vm251_vm4 = vmor %vm249_vm3, %vm250_vm2 }
 0x10c   : > { %v245_v21 = vmul.f32 %v388_v19, %v244_v20 }
 0x10e   : > { %v246_v22 = vmul.f32 0.5, %v245_v21 }
 0x110   : > { %v247_v23 = vsub.f32 1.5, %v246_v22 }
 0x112   : > { %v248_v24 = vmul.f32 %v388_v19, %v247_v23 }
 0x114   : > { %v252_v26 = vsel %vm251_vm4, %v388_v19, %v248_v24 }
 0x115   : > { %v253_v27 = vmul.f32 %v252_v26, %v236_v11 }
 0x117   : > { %v257_v29 = vmul.f32 %v382_v25, %v253_v27 }
 0x119   : > { %v261_v30 = vadd.f32 %v383_v28, %v257_v29 }
 0x11b   : > { %v262_v31 = vpack.c.bf16 %v261_v30, %v261_v30 }
 0x11d   : > { %368 = vmatmul.msk.bf16.vlgmr.msra.gmra.mxu0 %vm224_vm0, %v262_v31 }
 0x19a   : > { %v295_v33 = vpop.f32.mrf.mxu0 }
 0x19b   : > { %v296_v34 = vadd.f32 %v384_v32, %v295_v33 }
 0x19d   : > { %299 = vst [vmem:[%s219_s11] sm:$0xff] %v296_v34 }
 0x1a2   : > { %v297_v35 = vpop.f32.mrf.mxu0 }
 0x1a3 PF: > { %s15_s18 = sadd.s32 1, %s395_s18  }
 0x1a4   : > { %p12_p4 = scmp.ge.s32.totalorder %s15_s18, 4  }
 0x1a6   :  { %14 = sbr.rel (!%p12_p4) target bundleno = 1 (0x1), region = 70 }

// kernel: bigram_forward.2
= control target key start
LH: loop header
LB: loop body
LE: loop exit
PB: predicated region body
PF: predicated region fallthrough
CT: control target
= control target key end

     0   :  { %s1826_s29 = smov 0   ;;  %s1828_s30 = smov 0   ;;  %s2064_s0 = inlined_call_operand.vmem [shape: f32[2,8,32], index: 0, kind: input, shape index: {}, may-alias: {0,14}]   ;;  %s2065_s1 = inlined_call_operand.vmem [shape: f32[2,1,32], index: 1, kind: input, shape index: {}]   ;;  %s2066_s2 = inlined_call_operand.vmem [shape: f32[2,1,32], index: 2, kind: input, shape index: {}]   ;;  %s2067_s3 = inlined_call_operand.vmem [shape: bf16[2,32,32], index: 3, kind: input, shape index: {}]   ;;  %s2068_s4 = inlined_call_operand.vmem [shape: bf16[2,32,32], index: 4, kind: input, shape index: {}]   ;;  %s2069_s5 = inlined_call_operand.vmem [shape: bf16[2,32,32], index: 5, kind: input, shape index: {}]   ;;  %s2070_s6 = inlined_call_operand.vmem [shape: bf16[2,32,32], index: 6, kind: input, shape index: {}]   ;;  %s2071_s7 = inlined_call_operand.vmem [shape: f32[2,1,32], index: 7, kind: input, shape index: {}]   ;;  %s2072_s8 = inlined_call_operand.vmem [shape: f32[2,1,32], index: 8, kind: input, shape index: {}]   ;;  %s2073_s9 = inlined_call_operand.vmem [shape: f32[2,1,32], index: 9, kind: input, shape index: {}]   ;;  %s2074_s10 = inlined_call_operand.vmem [shape: bf16[2,32,128], index: 10, kind: input, shape index: {}]   ;;  %s2075_s11 = inlined_call_operand.vmem [shape: f32[2,1,128], index: 11, kind: input, shape index: {}]   ;;  %s2076_s12 = inlined_call_operand.vmem [shape: bf16[2,128,32], index: 12, kind: input, shape index: {}]   ;;  %s2077_s13 = inlined_call_operand.vmem [shape: f32[2,1,32], index: 13, kind: input, shape index: {}]   ;;  %s2078_s14 = inlined_call_operand.vmem [shape: f32[2,8,32], index: 14, kind: output, shape index: {}, may-alias: {0,14}]  }
   0x1   :  { %2084 = sst [smem:[#allocation9_spill]] %s2064_s0  ;;  %s1830_s15 = smov 0  }
   0x2   :  { %2085 = sst [smem:[#allocation10_spill]] %s2066_s2  ;;  %s1832_s16 = smov 0  }
   0x3   :  { %2086 = sst [smem:[#allocation11_spill]] %s2067_s3  ;;  %s1834_s17 = smov 0  }
   0x4   :  { %2087 = sst [smem:[#allocation12_spill]] %s2068_s4 }
   0x5   :  { %2088 = sst [smem:[#allocation13_spill]] %s2069_s5 }
   0x6   :  { %2089 = sst [smem:[#allocation14_spill]] %s2070_s6 }
   0x7   :  { %2090 = sst [smem:[#allocation15_spill]] %s2078_s14 }
   0x8 LB: > { %2091 = sst [smem:[#allocation2_spill]] %s1726_s29  ;;  %s33_s18 = sadd.s32 1, %s1734_s15  ;;  %s1742_s17 = sphi %s1834_s17, %s24_s17   ;;  %s1738_s16 = sphi %s1832_s16, %s2117_s16   ;;  %s1734_s15 = sphi %s1830_s15, %s2116_s15   ;;  %s1730_s30 = sphi %s1828_s30, %s2115_s30   ;;  %s1726_s29 = sphi %s1826_s29, %s2114_s29  }
   0x9   : > { %2092 = sst [smem:[#allocation3_spill]] %s1734_s15  ;;  %s36_s19 = sadd.s32 1, %s1738_s16 }
   0xa   : > { %2093 = sst [smem:[#allocation4_spill]] %s1738_s16  ;;  %p34_p0 = scmp.ge.s32.totalorder %s33_s18, 2 }
   0xb   : > { %2094 = sst [smem:[#allocation5_spill]] %s1742_s17  ;;  %p1501_p1 = scmp.ge.s32.totalorder %s1742_s17, 1 }
   0xc   : > { %p539_p2 = scmp.lt.s32.totalorder %s1742_s17, 5  ;;  %s2119_s18 = smov (%p34_p0, %s33_s18), 0 }
   0xd   : > { %2095 = sst [smem:[#allocation6_spill]] %s2119_s18  ;;  %s2121_s19 = smov (!%p34_p0, %s36_s19), %s1738_s16 }
   0xe   : > { %p540_p3 = pnand %p1501_p1, %p539_p2  ;;  %p38_p4 = scmp.ge.s32.totalorder %s2121_s19, 2 }
  0x10   : > { %s2123_s19 = smov (%p38_p4, %s2121_s19), 0  ;;  %543 = sbr.rel (%p540_p3) target bundleno = 1906 (0x772), region = 76 }
  0x11   : > { %2096 = sst [smem:[#allocation7_spill]] %s2123_s19 }
  0x15   : > { %p634_p5 = scmp.lt.s32.totalorder %s1730_s30, 1  ;;  %p638_p6 = scmp.lt.s32.totalorder %s1726_s29, 1 }
  0x16   : > { %s2097_s0 = sld [smem:[#allocation9_spill]] }
  0x17   : > { %s2125_s30 = smov (!%p634_p5, %s1730_s30), 1  ;;  %s2099_s3 = sld [smem:[#allocation11_spill]] }
  0x18   : > { %s1860_s20 = scalar_select %p638_p6, %s1726_s29, 1 }
  0x19   : > { %s1502_s21 = sshll.u32 %s2125_s30, 3  ;;  %s2100_s4 = sld [smem:[#allocation12_spill]] }
  0x1a   : > { %s1604_s16 = sshll.u32 %s1860_s20, 4  ;;  %s2101_s5 = sld [smem:[#allocation13_spill]] }
  0x1b   : > { %s2102_s6 = sld [smem:[#allocation14_spill]] }
  0x1c   : > { %s637_s24 = scalar_lea.vmem %s2097_s0, %s1502_s21  ;;  %s2104_s14 = sld [smem:[#allocation15_spill]] }
  0x1d   : > { %s1877_s29 = scalar_lea.vmem %s2099_s3, %s1604_s16 }
  0x1f   : > { %s1882_s22 = scalar_lea.vmem %s2100_s4, %s1604_s16  ;;  %s688_s4 = scalar_lea.vmem %s2077_s13, %s1860_s20 }
  0x20   : > { %s1887_s25 = scalar_lea.vmem %s2101_s5, %s1604_s16  ;;  %s1909_s5 = scalar_lea.vmem %s2074_s10, %s1604_s16 }
  0x21   : > { %s1892_s19 = scalar_lea.vmem %s2102_s6, %s1604_s16  ;;  %s680_s6 = scalar_lea.vmem %s2075_s11, %s1860_s20 }
  0x22   : > { %2103 = sst [smem:[#allocation8_spill]] %s1892_s19  ;;  %s1609_s19 = sshll.u32 %s1860_s20, 6 }
  0x23   : > { %s1919_s15 = scalar_lea.vmem %s2076_s12, %s1609_s19  ;;  %s1928_s0 = scalar_lea.vmem %s2104_s14, %s1502_s21 }
  0x24   : > { %s2105_s16 = sld [smem:[#allocation2_spill]] }
  0x2a   : > { %p1516_p7 = scmp.ne.s32.totalorder %s2105_s16, 0 }
  0x2c   : > { %697 = sbr.rel (%p1516_p7) target bundleno = 51 (0x33), region = 80 }
  0x31   : > { %v698_v0 = vld [vmem:[%s637_s24] sm:$0xff]  ;;  %vm699_vm0 = vcmask 261120  }
  0x32   : > { %700 = vst.msk [vmem:[%s1928_s0] sm:$0xff] %vm699_vm0, %v698_v0 }
  0x33 PF: > { %vm704_vm1 = vcmask 261120   ;;  %v1744_v3 = vmov 32.0   ;;  %v1611_v15 = vld [vmem:[%s1877_s29 + $0x8] sm:$0xff]  ;;  %v1610_v17 = vld [vmem:[%s1877_s29] sm:$0xff]  ;;  %s2106_s21 = scalar_lea.vmem %s2065_s1, %s1860_s20  ;;  %s1745_s14 = smov 120   ;;  %vm881_vm6 = vcmask 64512  }
  0x34   : > { %1682 = vrcp.f32 %v1744_v3  ;;  %v1613_v16 = vld [vmem:[%s1882_s22 + $0x8] sm:$0xff]  ;;  %768 = vmatpush.bf16.msra.mxu0 %v1611_v15  ;;  %v1612_v18 = vld [vmem:[%s1882_s22] sm:$0xff]  ;;  %s1746_s23 = smov 104   ;;  %s1747_s27 = smov 112   ;;  %vm1015_vm7 = vcmask 1043456   ;;  %v876_v3 = vlaneseq  ;;  %vm1102_vm9 = vcmask 130048  }
  0x35   : > { %797 = vmatpush.bf16.msra.mxu2 %v1613_v16  ;;  %v1615_v19 = vld [vmem:[%s1887_s25 + $0x8] sm:$0xff]  ;;  %v1614_v22 = vld [vmem:[%s1887_s25] sm:$0xff]  ;;  %s2107_s25 = sld [smem:[#allocation10_spill]]  ;;  %s1748_s18 = smov 8   ;;  %vm1104_vm10 = vcmask 195584  }
  0x36   : > { %v1675_v30 = vld [vmem:[%s2106_s21] ss:$0 sm:$0xff]  ;;  %s2109_s26 = sld [smem:[#allocation8_spill]]  ;;  %s1749_s28 = smov 16  }
  0x37   : > { %s1750_s3 = smov 24   ;;  %s2110_s16 = scalar_lea.vmem %s2071_s7, %s1860_s20 }
  0x38   : > { %769 = vmatpush.bf16.msra.mxu0 %v1610_v17  ;;  %s2111_s29 = scalar_lea.vmem %s2072_s8, %s1860_s20  ;;  %s2112_s22 = scalar_lea.vmem %s2073_s9, %s1860_s20 }
  0x39   : > { %v1933_v1 = vld [vmem:[%s1928_s0] sm:$0xff]  ;;  %798 = vmatpush.bf16.msra.mxu2 %v1612_v18 }
  0x3a   : > { %v705_v2 = vsel %vm704_vm1, %v1933_v1, 0.0  ;;  %v1683_v4 = vpop.eup %1682 }
  0x3b   : > { %706 = vadd.xlane.f32.xlu0 %v705_v2  ;;  %v709_v5 = vmul.f32 32.0, %v1683_v4  ;;  %vm713_vm2 = vweird.f32 %v1683_v4  ;;  %s2108_s19 = scalar_lea.vmem %s2107_s25, %s1860_s20 }
  0x3c   : > { %v1676_v33 = vld [vmem:[%s2108_s19] ss:$0 sm:$0xff] }
  0x3d   : > { %v710_v6 = vsub.f32 1.0, %v709_v5  ;;  %826 = vmatpush.bf16.msrb.mxu2 %v1615_v19  ;;  %v879_v5 = vand.u32 127, %v876_v3 }
  0x3f   : > { %v711_v7 = vmul.f32 %v1683_v4, %v710_v6 }
  0x41   : > { %v712_v8 = vadd.f32 %v1683_v4, %v711_v7  ;;  %827 = vmatpush.bf16.msrb.mxu2 %v1614_v22 }
  0x43   : > { %v1937_v9 = vsel %vm713_vm2, %v1683_v4, %v712_v8  ;;  %v877_v4 = vshrl.u32 %v876_v3, 7 }
  0x45   : > { %vm880_vm8 = vcmp.le.s32.totalorder %v879_v5, %v877_v4 }
  0xae   : > { %v707_v10 = vpop.xlane.xlu0 %706 }
  0xaf   : > { %v715_v11 = vmul.f32 %v1937_v9, %v707_v10 }
  0xb1   : > { %v716_v12 = vsub.f32 %v1933_v1, %v715_v11 }
  0xb3   : > { %v717_v13 = vmul.f32 %v716_v12, %v716_v12 }
  0xb5   : > { %v718_v14 = vsel %vm704_vm1, %v717_v13, 0.0 }
  0xb6   : > { %719 = vadd.xlane.f32.xlu0 %v718_v14 }
 0x129   : > { %v720_v20 = vpop.xlane.xlu0 %719 }
 0x12a   : > { %v721_v21 = vmul.f32 %v720_v20, %v1937_v9 }
 0x12c   : > { %v722_v23 = vadd.f32 1e-05, %v721_v21 }
 0x12e   : > { %1684 = vrsqrt.f32 %v722_v23  ;;  %vm729_vm4 = vweird.f32 %v722_v23 }
 0x134   : > { %v1685_v24 = vpop.eup %1684 }
 0x135   : > { %v724_v25 = vmul.f32 %v1685_v24, %v722_v23  ;;  %vm730_vm3 = vweird.f32 %v1685_v24 }
 0x136   : > { %vm731_vm5 = vmor %vm729_vm4, %vm730_vm3 }
 0x137   : > { %v725_v26 = vmul.f32 %v1685_v24, %v724_v25 }
 0x139   : > { %v726_v27 = vmul.f32 0.5, %v725_v26 }
 0x13b   : > { %v727_v28 = vsub.f32 1.5, %v726_v27 }
 0x13d   : > { %v728_v29 = vmul.f32 %v1685_v24, %v727_v28 }
 0x13f   : > { %v732_v31 = vsel %vm731_vm5, %v1685_v24, %v728_v29 }
 0x140   : > { %v733_v32 = vmul.f32 %v732_v31, %v716_v12 }
 0x142   : > { %v737_v34 = vmul.f32 %v1675_v30, %v733_v32 }
 0x144   : > { %v741_v35 = vadd.f32 %v1676_v33, %v737_v34 }
 0x146   : > { %v742_v36 = vpack.c.bf16 %v741_v35, %v741_v35 }
 0x148   : > { %1525 = vmatmul.msk.bf16.vlgmr.msra.gmra.mxu0 %vm704_vm1, %v742_v36  ;;  %1534 = vmatmul.msk.bf16.vlgmr.msra.gmra.mxu2 %vm704_vm1, %v742_v36 }
 0x158   : > { %1543 = vmatmul.msk.bf16.vlgmr.msrb.gmra.mxu2 %vm704_vm1, %v742_v36 }
 0x1c5   : > { %v771_v37 = vpop.f32.mrf.mxu0 }
 0x1c6   : > { %v833_v38 = vmul.f32 0.17677669, %v771_v37 }
 0x1c8   : > { %835 = vrot.lane.b32.xlu0 %v833_v38, %s1745_s14  ;;  %v844_v44 = vpack.c.bf16 %v833_v38, %v833_v38 }
 0x1cb   : > { %v800_v39 = vpop.f32.mrf.mxu2 }
 0x1cc   : > { %849 = vrot.lane.b32.xlu2 %v800_v39, %s1745_s14  ;;  %855 = vrot.lane.b32.xlu1 %v800_v39, %s1746_s23  ;;  %v858_v40 = vpack.c.bf16 %v800_v39, %v800_v39 }
 0x1cd   : > { %v773_v41 = vpop.f32.mrf.mxu0 }
 0x1ce   : > { %v886_v42 = vsel %vm881_vm6, %v858_v40, 0 }
 0x1cf   : > { %895 = vmatpush.bf16.xpose.msra.mxu3 %v886_v42 }
 0x1d3   : > { %v802_v43 = vpop.f32.mrf.mxu2 }
 0x1d4   : > { %852 = vrot.lane.b32.xlu2 %v800_v39, %s1747_s27  ;;  %841 = vrot.lane.b32.xlu1 %v833_v38, %s1746_s23 }
 0x1d6   : > { %1544 = vmatmul.msk.bf16.vlgmr.msra.gmra.mxu3 %vm881_vm6, %v844_v44 }
 0x1db   : > { %v1969_v45 = vpop.f32.mrf.mxu2 }
 0x1dc   : > { %838 = vrot.lane.b32.xlu1 %v833_v38, %s1747_s27  ;;  %v872_v46 = vpack.c.bf16 %v1969_v45, %v1969_v45 }
 0x1de   : > { %v1017_v47 = vsel %vm1015_vm7, %v872_v46, 0 }
 0x1df   : > { %1026 = vmatpush.bf16.msrb.mxu3 %v1017_v47 }
 0x1e3   : > { %v831_v48 = vpop.f32.mrf.mxu2 }
 0x226   : > { %v850_v49 = vpop.permute.xlu2 %849 }
 0x227   : > { %v859_v50 = vpack.c.bf16 %v850_v49, %v850_v49 }
 0x229   : > { %v905_v51 = vsel %vm881_vm6, %v859_v50, 0 }
 0x22a   : > { %914 = vmatpush.bf16.xpose.msrb.mxu0 %v905_v51 }
 0x22e   : > { %v853_v52 = vpop.permute.xlu2 %852 }
 0x22f   : > { %v860_v53 = vpack.c.bf16 %v853_v52, %v853_v52 }
 0x231   : > { %v924_v54 = vsel %vm881_vm6, %v860_v53, 0 }
 0x232   : > { %933 = vmatpush.bf16.xpose.msra.mxu1 %v924_v54 }
 0x23a   : > { %v836_v55 = vpop.permute.xlu0 %835 }
 0x23b   : > { %v845_v56 = vpack.c.bf16 %v836_v55, %v836_v55 }
 0x23d   : > { %1545 = vmatmul.msk.bf16.vlgmr.msrb.gmra.mxu0 %vm881_vm6, %v845_v56 }
 0x23e   : > { %v856_v57 = vpop.permute.xlu1 %855 }
 0x23f   : > { %v861_v58 = vpack.c.bf16 %v856_v57, %v856_v57 }
 0x241   : > { %v943_v59 = vsel %vm881_vm6, %v861_v58, 0 }
 0x242   : > { %952 = vmatpush.bf16.xpose.msra.mxu2 %v943_v59 }
 0x246   : > { %v842_v60 = vpop.permute.xlu1 %841 }
 0x247   : > { %v847_v61 = vpack.c.bf16 %v842_v60, %v842_v60 }
 0x249   : > { %1547 = vmatmul.msk.bf16.vlgmr.msra.gmra.mxu2 %vm881_vm6, %v847_v61 }
 0x24e   : > { %v839_v62 = vpop.permute.xlu1 %838 }
 0x24f   : > { %v846_v63 = vpack.c.bf16 %v839_v62, %v839_v62 }
 0x251   : > { %1546 = vmatmul.msk.bf16.vlgmr.msra.gmra.mxu1 %vm881_vm6, %v846_v63 }
 0x259   : > { %v897_v0 = vpop.f32.mrf.mxu3 }
 0x25a   : > { %v960_v17 = vsel %vm880_vm8, %v897_v0, -inf }
 0x25b   : > { %v964_v20 = vsel %vm881_vm6, %v960_v17, -inf }
 0x261   : > { %v899_v2 = vpop.f32.mrf.mxu3 }
 0x2ba   : > { %v916_v6 = vpop.f32.mrf.mxu0 }
 0x2bb   : > { %v961_v7 = vsel %vm880_vm8, %v916_v6, -inf }
 0x2bc   : > { %v967_v8 = vsel %vm881_vm6, %v961_v7, -inf }
 0x2bd   : > { %968 = vmax.xlane.f32.xlu1 %v967_v8 }
 0x2c2   : > { %v918_v10 = vpop.f32.mrf.mxu0 }
 0x2cc   : > { %v954_v11 = vpop.f32.mrf.mxu2 }
 0x2cd   : > { %v963_v12 = vsel %vm880_vm8, %v954_v11, -inf }
 0x2ce   : > { %v935_v13 = vpop.f32.mrf.mxu1  ;;  %v973_v14 = vsel %vm881_vm6, %v963_v12, -inf }
 0x2cf   : > { %v962_v15 = vsel %vm880_vm8, %v935_v13, -inf  ;;  %974 = vmax.xlane.f32.xlu2 %v973_v14  ;;  %v1616_v13 = vld [vmem:[%s2109_s26] sm:$0xff] }
 0x2d0   : > { %v970_v16 = vsel %vm881_vm6, %v962_v15, -inf }
 0x2d1   : > { %971 = vmax.xlane.f32.xlu0 %v970_v16 }
 0x2d4   : > { %v956_v18 = vpop.f32.mrf.mxu2 }
 0x2d6   : > { %v937_v19 = vpop.f32.mrf.mxu1 }
 0x2d7   : > { %965 = vmax.xlane.f32.xlu2 %v964_v20 }
 0x2e5   : > { %863 = vrot.lane.b32.xlu0 %v1969_v45, %s1745_s14 }
 0x330   : > { %v969_v21 = vpop.xlane.xlu1 %968 }
 0x331   : > { %v977_v22 = vsub.f32 %v961_v7, %v969_v21  ;;  %v1677_v21 = vld [vmem:[%s2110_s16] ss:$0 sm:$0xff] }
 0x333   : > { %v982_v23 = vmul.f32 1.442695, %v977_v22 }
 0x335   : > { %1686 = vpow2.f32 %v982_v23 }
 0x33b   : > { %v1687_v24 = vpop.eup %1686 }
 0x33c   : > { %v991_v25 = vsel %vm881_vm6, %v1687_v24, 0.0 }
 0x33d   : > { %992 = vadd.xlane.f32.xlu1 %v991_v25 }
 0x342   : > { %v975_v26 = vpop.xlane.xlu2 %974 }
 0x343   : > { %v979_v29 = vsub.f32 %v963_v12, %v975_v26  ;;  %v1617_v12 = vld [vmem:[%s2109_s26 + $0x8] sm:$0xff] }
 0x344   : > { %v972_v27 = vpop.xlane.xlu0 %971  ;;  %1136 = vmatpush.bf16.msra.mxu3 %v1617_v12 }
 0x345   : > { %v978_v28 = vsub.f32 %v962_v15, %v972_v27  ;;  %v986_v31 = vmul.f32 1.442695, %v979_v29 }
 0x347   : > { %v984_v30 = vmul.f32 1.442695, %v978_v28 }
 0x348   : > { %1137 = vmatpush.bf16.msra.mxu3 %v1616_v13 }
 0x349   : > { %1688 = vpow2.f32 %v984_v30 }
 0x34a   : > { %v966_v32 = vpop.xlane.xlu2 %965  ;;  %1690 = vpow2.f32 %v986_v31 }
 0x34b   : > { %v976_v33 = vsub.f32 %v960_v17, %v966_v32  ;;  %v1619_v32 = vld [vmem:[%s1909_s5 + $0x8] sm:$0xff] }
 0x34d   : > { %v980_v34 = vmul.f32 1.442695, %v976_v33  ;;  %v1618_v33 = vld [vmem:[%s1909_s5] sm:$0xff] }
 0x34f   : > { %v1689_v35 = vpop.eup %1688  ;;  %1692 = vpow2.f32 %v980_v34 }
 0x350   : > { %v994_v36 = vsel %vm881_vm6, %v1689_v35, 0.0  ;;  %v1691_v37 = vpop.eup %1690 }
 0x351   : > { %995 = vadd.xlane.f32.xlu2 %v994_v36  ;;  %v997_v42 = vsel %vm881_vm6, %v1691_v37, 0.0  ;;  %v1626_v36 = vld [vmem:[%s1919_s15 + $0x30] sm:$0xff] }
 0x355   : > { %v1693_v38 = vpop.eup %1692 }
 0x356   : > { %869 = vrot.lane.b32.xlu1 %v1969_v45, %s1746_s23  ;;  %v988_v39 = vsel %vm881_vm6, %v1693_v38, 0.0 }
 0x357   : > { %v864_v40 = vpop.permute.xlu0 %863  ;;  %989 = vadd.xlane.f32.xlu0 %v988_v39  ;;  %v1624_v39 = vld [vmem:[%s1919_s15 + $0x20] sm:$0xff] }
 0x358   : > { %v873_v41 = vpack.c.bf16 %v864_v40, %v864_v40 }
 0x359   : > { %998 = vadd.xlane.f32.xlu2 %v997_v42  ;;  %v1623_v42 = vld [vmem:[%s1919_s15 + $0x18] sm:$0xff] }
 0x35a   : > { %v1036_v43 = vsel %vm1015_vm7, %v873_v41, 0 }
 0x35b   : > { %1045 = vmatpush.bf16.msra.mxu0 %v1036_v43 }
 0x35f   : > { %1206 = vmatpush.bf16.msrb.mxu0 %v1619_v32 }
 0x363   : > { %1207 = vmatpush.bf16.msrb.mxu0 %v1618_v33 }
 0x371   : > { %866 = vrot.lane.b32.xlu2 %v1969_v45, %s1747_s27 }
 0x3b0   : > { %v993_v44 = vpop.xlane.xlu1 %992 }
 0x3b1   : > { %1694 = vrcp.f32 %v993_v44 }
 0x3b7   : > { %v1695_v46 = vpop.eup %1694 }
 0x3b8   : > { %v1005_v47 = vmul.f32 %v1695_v46, %v1687_v24 }
 0x3ba   : > { %v1009_v48 = vpack.c.bf16 %v1005_v47, %v1005_v47 }
 0x3bc   : > { %1549 = vmatmul.msk.bf16.vlgmr.msra.gmra.mxu0 %vm881_vm6, %v1009_v48  ;;  %v1678_v48 = vld [vmem:[%s2111_s29] ss:$0 sm:$0xff] }
 0x3c4   : > { %v996_v49 = vpop.xlane.xlu2 %995 }
 0x3c8   : > { %v870_v50 = vpop.permute.xlu1 %869 }
 0x3c9   : > { %v875_v51 = vpack.c.bf16 %v870_v50, %v870_v50 }
 0x3ca   : > { %v990_v52 = vpop.xlane.xlu0 %989 }
 0x3cb   : > { %v1074_v53 = vsel %vm1015_vm7, %v875_v51, 0  ;;  %1696 = vrcp.f32 %v990_v52  ;;  %v1679_v51 = vld [vmem:[%s2112_s22] ss:$0 sm:$0xff] }
 0x3cc   : > { %1698 = vrcp.f32 %v996_v49  ;;  %v999_v54 = vpop.xlane.xlu2 %998  ;;  %1083 = vmatpush.bf16.msrb.mxu2 %v1074_v53 }
 0x3cd   : > { %1700 = vrcp.f32 %v999_v54 }
 0x3d1   : > { %v1697_v55 = vpop.eup %1696 }
 0x3d2   : > { %v1699_v45 = vpop.eup %1698  ;;  %v1004_v56 = vmul.f32 %v1697_v55, %v1693_v38  ;;  %v1625_v38 = vld [vmem:[%s1919_s15 + $0x28] sm:$0xff] }
 0x3d3   : > { %v1701_v57 = vpop.eup %1700  ;;  %v1006_v61 = vmul.f32 %v1699_v45, %v1689_v35  ;;  %v1621_v55 = vld [vmem:[%s1919_s15 + $0x8] sm:$0xff]  ;;  %v1620_v45 = vld [vmem:[%s1919_s15] sm:$0xff] }
 0x3d4   : > { %v1008_v58 = vpack.c.bf16 %v1004_v56, %v1004_v56  ;;  %v1007_v59 = vmul.f32 %v1701_v57, %v1691_v37  ;;  %v867_v60 = vpop.permute.xlu2 %866  ;;  %v1680_v56 = vld [vmem:[%s680_s6] ss:$0 sm:$0xff] }
 0x3d5   : > { %v874_v62 = vpack.c.bf16 %v867_v60, %v867_v60  ;;  %v1010_v2 = vpack.c.bf16 %v1006_v61, %v1006_v61 }
 0x3d6   : > { %v1011_v63 = vpack.c.bf16 %v1007_v59, %v1007_v59  ;;  %1548 = vmatmul.msk.bf16.vlgmr.msrb.gmra.mxu3 %vm881_vm6, %v1008_v58 }
 0x3d7   : > { %v1055_v0 = vsel %vm1015_vm7, %v874_v62, 0  ;;  %v1681_v62 = vld [vmem:[%s688_s4] ss:$0 sm:$0xff] }
 0x3d8   : > { %1064 = vmatpush.bf16.msrb.mxu1 %v1055_v0  ;;  %1551 = vmatmul.msk.bf16.vlgmr.msrb.gmra.mxu2 %vm881_vm6, %v1011_v63 }
 0x3db   : > { %1550 = vmatmul.msk.bf16.vlgmr.msrb.gmra.mxu1 %vm881_vm6, %v1010_v2 }
 0x439   : > { %v1047_v3 = vpop.f32.mrf.mxu0 }
 0x43a   : > { %1090 = vrot.lane.b32.xlu1 %v1047_v3, %s1748_s18 }
 0x441   : > { %v1049_v4 = vpop.f32.mrf.mxu0 }
 0x458   : > { %v1066_v5 = vpop.f32.mrf.mxu1 }
 0x459   : > { %1094 = vrot.lane.b32.xlu2 %v1066_v5, %s1749_s28  ;;  %v1028_v6 = vpop.f32.mrf.mxu3 }
 0x45b   : > { %v1085_v7 = vpop.f32.mrf.mxu2 }
 0x45c   : > { %1098 = vrot.lane.b32.xlu1 %v1085_v7, %s1750_s3 }
 0x460   : > { %v1068_v8 = vpop.f32.mrf.mxu1 }
 0x461   : > { %v1030_v10 = vpop.f32.mrf.mxu3 }
 0x463   : > { %v1087_v11 = vpop.f32.mrf.mxu2 }
 0x4ac   : > { %v1091_v14 = vpop.permute.xlu1 %1090 }
 0x4ad   : > { %v1101_v16 = vsel %vm881_vm6, %v1028_v6, %v1091_v14 }
 0x4b3   : > { %v1095_v15 = vpop.permute.xlu2 %1094 }
 0x4b4   : > { %v1103_v17 = vsel %vm1102_vm9, %v1101_v16, %v1095_v15 }
 0x4ce   : > { %v1099_v18 = vpop.permute.xlu1 %1098 }
 0x4cf   : > { %v1105_v19 = vsel %vm1104_vm10, %v1103_v17, %v1099_v18 }
 0x4d0   : > { %v1106_v20 = vpack.c.bf16 %v1105_v19, %v1105_v19 }
 0x4d2   : > { %1560 = vmatmul.msk.bf16.vlgmr.msra.gmra.mxu3 %vm704_vm1, %v1106_v20 }
 0x555   : > { %v1139_v22 = vpop.f32.mrf.mxu3 }
 0x556   : > { %v1140_v23 = vadd.f32 %v1677_v21, %v1139_v22 }
 0x558   : > { %v1143_v24 = vadd.f32 %v1140_v23, %v1933_v1  ;;  %v1627_v1 = vld [vmem:[%s1919_s15 + $0x38] sm:$0xff] }
 0x559   : > { %1283 = vmatpush.bf16.msra.mxu1 %v1627_v1 }
 0x55a   : > { %v1146_v25 = vsel %vm704_vm1, %v1143_v24, 0.0 }
 0x55b   : > { %1147 = vadd.xlane.f32.xlu2 %v1146_v25 }
 0x55d   : > { %v1141_v26 = vpop.f32.mrf.mxu3  ;;  %1284 = vmatpush.bf16.msra.mxu1 %v1626_v36 }
 0x561   : > { %1285 = vmatpush.bf16.msra.mxu1 %v1625_v38 }
 0x565   : > { %1286 = vmatpush.bf16.msra.mxu1 %v1624_v39 }
 0x569   : > { %1287 = vmatpush.bf16.msra.mxu1 %v1623_v42 }
 0x5ce   : > { %v1148_v27 = vpop.xlane.xlu2 %1147 }
 0x5cf   : > { %v1149_v28 = vmul.f32 %v1148_v27, %v1937_v9 }
 0x5d1   : > { %v1150_v29 = vsub.f32 %v1143_v24, %v1149_v28 }
 0x5d3   : > { %v1151_v30 = vmul.f32 %v1150_v29, %v1150_v29 }
 0x5d5   : > { %v1152_v31 = vsel %vm704_vm1, %v1151_v30, 0.0 }
 0x5d6   : > { %1153 = vadd.xlane.f32.xlu1 %v1152_v31 }
 0x649   : > { %v1154_v34 = vpop.xlane.xlu1 %1153 }
 0x64a   : > { %v1155_v35 = vmul.f32 %v1154_v34, %v1937_v9  ;;  %v1622_v9 = vld [vmem:[%s1919_s15 + $0x10] sm:$0xff] }
 0x64b   : > { %1288 = vmatpush.bf16.msra.mxu1 %v1622_v9 }
 0x64c   : > { %v1156_v37 = vadd.f32 1e-05, %v1155_v35 }
 0x64e   : > { %1702 = vrsqrt.f32 %v1156_v37  ;;  %vm1163_vm12 = vweird.f32 %v1156_v37 }
 0x64f   : > { %1289 = vmatpush.bf16.msra.mxu1 %v1621_v55 }
 0x653   : > { %1290 = vmatpush.bf16.msra.mxu1 %v1620_v45 }
 0x654   : > { %v1703_v40 = vpop.eup %1702 }
 0x655   : > { %v1158_v41 = vmul.f32 %v1703_v40, %v1156_v37  ;;  %vm1164_vm11 = vweird.f32 %v1703_v40 }
 0x656   : > { %vm1165_vm13 = vmor %vm1163_vm12, %vm1164_vm11 }
 0x657   : > { %v1159_v43 = vmul.f32 %v1703_v40, %v1158_v41 }
 0x659   : > { %v1160_v44 = vmul.f32 0.5, %v1159_v43 }
 0x65b   : > { %v1161_v46 = vsub.f32 1.5, %v1160_v44 }
 0x65d   : > { %v1162_v47 = vmul.f32 %v1703_v40, %v1161_v46 }
 0x65f   : > { %v1166_v49 = vsel %vm1165_vm13, %v1703_v40, %v1162_v47 }
 0x660   : > { %v1167_v50 = vmul.f32 %v1166_v49, %v1150_v29 }
 0x662   : > { %v1171_v52 = vmul.f32 %v1678_v48, %v1167_v50 }
 0x664   : > { %v1175_v53 = vadd.f32 %v1679_v51, %v1171_v52 }
 0x666   : > { %v1176_v54 = vpack.c.bf16 %v1175_v53, %v1175_v53 }
 0x668   : > { %1569 = vmatmul.msk.bf16.vlgmr.msrb.gmra.mxu0 %vm704_vm1, %v1176_v54 }
 0x6e5   : > { %v1209_v57 = vpop.f32.mrf.mxu0 }
 0x6e6   : > { %v1210_v58 = vadd.f32 %v1680_v56, %v1209_v57 }
 0x6e8   : > { %v1213_v59 = vmax.f32 %v1210_v58, 0.0 }
 0x6ea   : > { %v1214_v60 = vpack.c.bf16 %v1213_v59, %v1213_v59 }
 0x6ec   : > { %1291 = vmatmul.bf16.vlgmr.msra.gmra.mxu1 %v1214_v60 }
 0x6ed   : > { %v1211_v61 = vpop.f32.mrf.mxu0 }
 0x769   : > { %v1292_v63 = vpop.f32.mrf.mxu1 }
 0x76a   : > { %v1293_v0 = vadd.f32 %v1681_v62, %v1292_v63 }
 0x76c   : > { %v1296_v2 = vadd.f32 %v1293_v0, %v1143_v24 }
 0x76e   : > { %1297 = vst.msk [vmem:[%s1928_s0] sm:$0xff] %vm704_vm1, %v1296_v2 }
 0x771   : > { %v1294_v3 = vpop.f32.mrf.mxu1 }
 0x772 PF: > { %s2113_s15 = sld [smem:[#allocation5_spill]] }
 0x773   : > { %s2114_s29 = sld [smem:[#allocation3_spill]] }
 0x774   : > { %s2115_s30 = sld [smem:[#allocation4_spill]] }
 0x775   : > { %s2117_s16 = sld [smem:[#allocation7_spill]] }
 0x778   : > { %s24_s17 = sadd.s32 1, %s2113_s15   ;;  %s2116_s15 = sld [smem:[#allocation6_spill]] }
 0x779   : > { %p21_p8 = scmp.ge.s32.totalorder %s24_s17, 6  }
 0x77b   :  { %23 = sbr.rel (!%p21_p8) target bundleno = 8 (0x8), region = 149 }

</bundles_post_ra>
